<compile_context>
chip_gen: v6e
topology: v6e:2x2x1
jax: 0.10.0
libtpu: 0.0.40
codegen_flags: <defaults>
</compile_context>

<pallas_src>
import functools

import jax
import jax.numpy as jnp
from jax.experimental import pallas as pl
from jax.experimental.pallas import tpu as pltpu


def _layer_norm(x, gamma, beta, eps=1e-5):
    mu = jnp.mean(x, axis=-1, keepdims=True)
    var = jnp.mean((x - mu) ** 2, axis=-1, keepdims=True)
    return (x - mu) * jax.lax.rsqrt(var + eps) * gamma + beta


# -----------------------------------------------------------------------------
# Pass 1: fused Q/K/V projection, written head-major (B, H, L, E) in bf16.
# -----------------------------------------------------------------------------
def qkv_proj_kernel(x_ref, wq_ref, bq_ref, wk_ref, bk_ref, wv_ref, bv_ref,
                    q_ref, k_ref, v_ref, *, n_heads, scale):
    x = x_ref[0].astype(jnp.bfloat16)                          # (tr, D)
    tr, d_model = x.shape
    e = d_model // n_heads

    def head_major(y):                                          # (tr, D) -> (H, tr, E)
        return jnp.transpose(y.reshape(tr, n_heads, e), (1, 0, 2))

    q = jnp.dot(x, wq_ref[...], preferred_element_type=jnp.float32) + bq_ref[0]
    k = jnp.dot(x, wk_ref[...], preferred_element_type=jnp.float32) + bk_ref[0]
    v = jnp.dot(x, wv_ref[...], preferred_element_type=jnp.float32) + bv_ref[0]
    q_ref[0] = head_major(q * scale).astype(jnp.bfloat16)       # fold 1/sqrt(E) once
    k_ref[0] = head_major(k).astype(jnp.bfloat16)
    v_ref[0] = head_major(v).astype(jnp.bfloat16)


# -----------------------------------------------------------------------------
# Pass 2: flash attention + out-projection + norm1 + FFN + norm2.
# -----------------------------------------------------------------------------
def attn_ffn_kernel(x_ref, q_ref, k_ref, v_ref,
                    wo_ref, bo_ref, g1_ref, be1_ref,
                    w1_ref, b1_ref, w2_ref, b2_ref,
                    g2_ref, be2_ref,
                    out_ref,
                    m_scr, l_scr, acc_scr,
                    *, seq_len, block_k, mask_keys):
    j = pl.program_id(2)
    nk = pl.num_programs(2)

    # ---- first key tile: reset online-softmax state ----
    @pl.when(j == 0)
    def _init():
        m_scr[...] = jnp.full(m_scr.shape, -jnp.inf, jnp.float32)
        l_scr[...] = jnp.zeros(l_scr.shape, jnp.float32)
        acc_scr[...] = jnp.zeros(acc_scr.shape, jnp.float32)

    # ---- every key tile: batched-head online-softmax update ----
    q = q_ref[0]                                                # (H, tq, E) bf16, pre-scaled
    k = k_ref[0]                                                # (H, tk, E) bf16
    v = v_ref[0]                                                # (H, tk, E) bf16

    s = jnp.einsum('hqe,hke->hqk', q, k,
                   preferred_element_type=jnp.float32)          # (H, tq, tk) f32
    if mask_keys:                                               # static; only when L was padded
        key_idx = j * block_k + jax.lax.broadcasted_iota(
            jnp.int32, (1, 1, block_k), 2)
        s = jnp.where(key_idx < seq_len, s, -jnp.inf)

    m_prev = m_scr[...]
    m_new = jnp.maximum(m_prev, jnp.max(s, axis=-1, keepdims=True))
    alpha = jnp.exp(m_prev - m_new)
    p = jnp.exp(s - m_new)
    l_scr[...] = alpha * l_scr[...] + jnp.sum(p, axis=-1, keepdims=True)
    acc_scr[...] = alpha * acc_scr[...] + jnp.einsum(
        'hqk,hke->hqe', p.astype(jnp.bfloat16), v,
        preferred_element_type=jnp.float32)
    m_scr[...] = m_new

    # ---- last key tile: out-proj + residual/norm1 + FFN + residual/norm2 ----
    @pl.when(j == nk - 1)
    def _finalize():
        n_heads, tq, e = acc_scr.shape
        ctx = acc_scr[...] * pl.reciprocal(l_scr[...], approx=True)      # (H, tq, E)
        attn = jnp.transpose(ctx, (1, 0, 2)).reshape(tq, n_heads * e)    # torch head-concat
        new_x = jnp.dot(attn.astype(jnp.bfloat16), wo_ref[...],
                        preferred_element_type=jnp.float32) + bo_ref[0]
        x1 = _layer_norm(x_ref[0] + new_x, g1_ref[0], be1_ref[0])
        y = jnp.dot(x1.astype(jnp.bfloat16), w1_ref[...],
                    preferred_element_type=jnp.float32) + b1_ref[0]
        y = jnp.maximum(y, 0.0)                                           # activation='relu'
        y = jnp.dot(y.astype(jnp.bfloat16), w2_ref[...],
                    preferred_element_type=jnp.float32) + b2_ref[0]
        out_ref[0] = _layer_norm(x1 + y, g2_ref[0], be2_ref[0]).astype(out_ref.dtype)


# -----------------------------------------------------------------------------
# Wrapper
# -----------------------------------------------------------------------------
def _choose_tile(L, pref=128, mult=8):
    """Row tile (multiple of `mult`, ~<= pref) and padded sequence length."""
    n_tiles = max(1, (L + pref - 1) // pref)
    t = (L + n_tiles - 1) // n_tiles
    t = ((t + mult - 1) // mult) * mult
    return t, n_tiles * t


def _vmem_limit(block_bytes, scratch_bytes=0):
    # Blocks are double-buffered by the pipeline; add margin, floor and cap.
    est = 2 * block_bytes + scratch_bytes + (4 << 20)
    return int(max(32 << 20, min(est, 110 << 20)))


def encoder_layer_forward(x, params, n_heads, *, tile=128):
    """x: (B, L, D) float32.  Returns (out (B, L, D) float32, attn=None).

    tile: row-tile preference (128 suits v5e; 256 is preferable on v6e/v7x).
    """
    B, L, D = x.shape
    H = n_heads
    assert D % H == 0, "d_model must be divisible by n_heads"
    E = D // H
    F = params["w1"].shape[1]

    tq, L_pad = _choose_tile(L, pref=tile)
    tk = tq
    n_q = L_pad // tq
    n_k = L_pad // tk
    x_p = x if L_pad == L else jnp.pad(x, ((0, 0), (0, L_pad - L), (0, 0)))

    # bf16 matmul operands (f32 accumulation inside the kernels).
    bf16 = lambda a: a.astype(jnp.bfloat16)
    wq, wk, wv = bf16(params["wq"]), bf16(params["wk"]), bf16(params["wv"])
    wo, w1, w2 = bf16(params["wo"]), bf16(params["w1"]), bf16(params["w2"])

    # ---- pass 1: Q/K/V projection (runs once per row; K/V never recomputed) ----
    pfull = lambda shp: pl.BlockSpec(shp, lambda b, i: (0, 0))
    proj_bytes = (tq * D * 4 + 3 * D * D * 2 + 3 * D * 4 + 3 * H * tq * E * 2)
    q, k, v = pl.pallas_call(
        functools.partial(qkv_proj_kernel, n_heads=H, scale=1.0 / (E ** 0.5)),
        out_shape=(jax.ShapeDtypeStruct((B, H, L_pad, E), jnp.bfloat16),) * 3,
        grid=(B, n_q),
        in_specs=[
            pl.BlockSpec((1, tq, D), lambda b, i: (b, i, 0)),
            pfull((D, D)), pfull((1, D)),       # wq, bq
            pfull((D, D)), pfull((1, D)),       # wk, bk
            pfull((D, D)), pfull((1, D)),       # wv, bv
        ],
        out_specs=(pl.BlockSpec((1, H, tq, E), lambda b, i: (b, 0, i, 0)),) * 3,
        compiler_params=pltpu.CompilerParams(
            dimension_semantics=("parallel", "parallel"),
            vmem_limit_bytes=_vmem_limit(proj_bytes)),
    )(x_p, wq, params["bq"], wk, params["bk"], wv, params["bv"])

    # ---- pass 2: flash attention + out-proj + norms + FFN, fused ----
    afull = lambda shp: pl.BlockSpec(shp, lambda b, i, j: (0, 0))
    attn_bytes = (tq * D * 4 + 3 * H * tq * E * 2
                  + D * D * 2 + D * F * 2 + F * D * 2
                  + (6 * D + F) * 4 + tq * D * 4)
    scratch_bytes = 2 * H * tq * 4 + H * tq * E * 4
    out = pl.pallas_call(
        functools.partial(attn_ffn_kernel, seq_len=L, block_k=tk,
                          mask_keys=(L_pad != L)),
        out_shape=jax.ShapeDtypeStruct((B, L_pad, D), jnp.float32),
        grid=(B, n_q, n_k),
        in_specs=[
            pl.BlockSpec((1, tq, D), lambda b, i, j: (b, i, 0)),         # x (residual)
            pl.BlockSpec((1, H, tq, E), lambda b, i, j: (b, 0, i, 0)),   # q rows
            pl.BlockSpec((1, H, tk, E), lambda b, i, j: (b, 0, j, 0)),   # k rows
            pl.BlockSpec((1, H, tk, E), lambda b, i, j: (b, 0, j, 0)),   # v rows
            afull((D, D)), afull((1, D)),                                # wo, bo
            afull((1, D)), afull((1, D)),                                # norm1 gamma, beta
            afull((D, F)), afull((1, F)),                                # conv1 (k=1) as linear
            afull((F, D)), afull((1, D)),                                # conv2 (k=1) as linear
            afull((1, D)), afull((1, D)),                                # norm2 gamma, beta
        ],
        out_specs=pl.BlockSpec((1, tq, D), lambda b, i, j: (b, i, 0)),
        scratch_shapes=[
            pltpu.VMEM((H, tq, 1), jnp.float32),    # running row max
            pltpu.VMEM((H, tq, 1), jnp.float32),    # running softmax denom
            pltpu.VMEM((H, tq, E), jnp.float32),    # running context accumulator
        ],
        compiler_params=pltpu.CompilerParams(
            dimension_semantics=("parallel", "parallel", "arbitrary"),
            vmem_limit_bytes=_vmem_limit(attn_bytes, scratch_bytes)),
    )(x_p, q, k, v,
      wo, params["bo"], params["g1"], params["be1"],
      w1, params["b1"], w2, params["b2"],
      params["g2"], params["be2"])

    if L_pad != L:
        out = out[:, :L, :]
    # FullAttention(output_attention=False) returns attn=None
    return out, None


def init_params(key, d_model, d_ff):
    ks = jax.random.split(key, 8)
    nrm = lambda k, shp: (0.02 * jax.random.normal(k, shp)).astype(jnp.float32)
    z = lambda shp: jnp.zeros(shp, jnp.float32)
    o = lambda shp: jnp.ones(shp, jnp.float32)
    return {
        "wq": nrm(ks[0], (d_model, d_model)), "bq": z((1, d_model)),
        "wk": nrm(ks[1], (d_model, d_model)), "bk": z((1, d_model)),
        "wv": nrm(ks[2], (d_model, d_model)), "bv": z((1, d_model)),
        "wo": nrm(ks[3], (d_model, d_model)), "bo": z((1, d_model)),
        "g1": o((1, d_model)), "be1": z((1, d_model)),
        # conv1: PyTorch weight (d_ff, d_model, 1) -> linear (d_model, d_ff)
        "w1": nrm(ks[4], (d_model, d_ff)), "b1": z((1, d_ff)),
        # conv2: PyTorch weight (d_model, d_ff, 1) -> linear (d_ff, d_model)
        "w2": nrm(ks[5], (d_ff, d_model)), "b2": z((1, d_model)),
        "g2": o((1, d_model)), "be2": z((1, d_model)),
    }


def _reference_forward(x, params, n_heads):
    """Pure-JAX f32 reference of the PyTorch EncoderLayer forward (eval mode)."""
    B, L, D = x.shape
    E = D // n_heads
    q = x @ params["wq"] + params["bq"][0]
    k = x @ params["wk"] + params["bk"][0]
    v = x @ params["wv"] + params["bv"][0]
    split = lambda t: t.reshape(B, L, n_heads, E).transpose(0, 2, 1, 3)
    s = jnp.einsum('bhqe,bhke->bhqk', split(q), split(k)) / (E ** 0.5)
    p = jax.nn.softmax(s, axis=-1)
    ctx = jnp.einsum('bhqk,bhke->bhqe', p, split(v))
    attn = ctx.transpose(0, 2, 1, 3).reshape(B, L, D)
    new_x = attn @ params["wo"] + params["bo"][0]

    def ln(t, g, b):
        mu = t.mean(-1, keepdims=True)
        var = ((t - mu) ** 2).mean(-1, keepdims=True)
        return (t - mu) * jax.lax.rsqrt(var + 1e-5) * g[0] + b[0]

    x1 = ln(x + new_x, params["g1"], params["be1"])
    y = jnp.maximum(x1 @ params["w1"] + params["b1"][0], 0.0)
    y = y @ params["w2"] + params["b2"][0]
    return ln(x1 + y, params["g2"], params["be2"])


if __name__ == "__main__":
    B, L, D, H = 2, 8, 32, 4
    d_ff = 4 * D  # default d_ff = 4 * d_model

    key = jax.random.PRNGKey(0)
    kx, kp = jax.random.split(key)
    x = jax.random.normal(kx, (B, L, D), dtype=jnp.float32)
    params = init_params(kp, D, d_ff)

    out, attn = encoder_layer_forward(x, params, n_heads=H)
    out = jax.block_until_ready(out)
    assert out.shape == (B, L, D) and out.dtype == jnp.float32
    assert bool(jnp.all(jnp.isfinite(out)))

    ref = _reference_forward(x, params, H)
    err = float(jnp.max(jnp.abs(out - ref)))
    assert err < 5e-2, f"max abs error vs f32 reference too large: {err}"
    print("KERNEL_OK")
</pallas_src>

<mosaic_0001>
module attributes {stable_mosaic.version = 11 : i64} {
  func.func @qkv_proj_kernel(%arg0: i32, %arg1: i32, %arg2: memref<1x8x32xf32, #tpu.memory_space<vmem>>, %arg3: memref<32x32xbf16, #tpu.memory_space<vmem>>, %arg4: memref<1x32xf32, #tpu.memory_space<vmem>>, %arg5: memref<32x32xbf16, #tpu.memory_space<vmem>>, %arg6: memref<1x32xf32, #tpu.memory_space<vmem>>, %arg7: memref<32x32xbf16, #tpu.memory_space<vmem>>, %arg8: memref<1x32xf32, #tpu.memory_space<vmem>>, %arg9: memref<1x4x8x8xbf16, #tpu.memory_space<vmem>>, %arg10: memref<1x4x8x8xbf16, #tpu.memory_space<vmem>>, %arg11: memref<1x4x8x8xbf16, #tpu.memory_space<vmem>>) attributes {dimension_semantics = [#tpu.dimension_semantics<parallel>, #tpu.dimension_semantics<parallel>], iteration_bounds = array<i64: 2, 1>, scalar_prefetch = 0 : i64, scratch_operands = 0 : i64, tpu.core_type = #tpu.core_type<tc>, window_params = [{transform_indices = @transform_0, window_bounds = array<i64: 1, 8, 32>}, {pipeline_mode = #tpu.pipeline_mode<synchronous>, transform_indices = @transform_1, window_bounds = array<i64: 32, 32>}, {pipeline_mode = #tpu.pipeline_mode<synchronous>, transform_indices = @transform_2, window_bounds = array<i64: 1, 32>}, {pipeline_mode = #tpu.pipeline_mode<synchronous>, transform_indices = @transform_3, window_bounds = array<i64: 32, 32>}, {pipeline_mode = #tpu.pipeline_mode<synchronous>, transform_indices = @transform_4, window_bounds = array<i64: 1, 32>}, {pipeline_mode = #tpu.pipeline_mode<synchronous>, transform_indices = @transform_5, window_bounds = array<i64: 32, 32>}, {pipeline_mode = #tpu.pipeline_mode<synchronous>, transform_indices = @transform_6, window_bounds = array<i64: 1, 32>}, {transform_indices = @transform_7, window_bounds = array<i64: 1, 4, 8, 8>}, {transform_indices = @transform_8, window_bounds = array<i64: 1, 4, 8, 8>}, {transform_indices = @transform_9, window_bounds = array<i64: 1, 4, 8, 8>}]} {
    %c0 = arith.constant 0 : index
    %c0_0 = arith.constant 0 : index
    %c0_1 = arith.constant 0 : index
    %0 = vector.load %arg2[%c0, %c0_0, %c0_1] : memref<1x8x32xf32, #tpu.memory_space<vmem>>, vector<1x8x32xf32>
    %1 = vector.shape_cast %0 : vector<1x8x32xf32> to vector<8x32xf32>
    %2 = arith.truncf %1 : vector<8x32xf32> to vector<8x32xbf16>
    %c0_2 = arith.constant 0 : index
    %c0_3 = arith.constant 0 : index
    %3 = vector.load %arg3[%c0_2, %c0_3] : memref<32x32xbf16, #tpu.memory_space<vmem>>, vector<32x32xbf16>
    %cst = arith.constant dense<0.000000e+00> : vector<8x32xf32>
    %4 = tpu.matmul %2, %3, %cst {dimension_numbers = #tpu.dot_dimension_numbers<[1], [0], [0], [1], [0, 0, 1, 1], [], []>} : vector<8x32xbf16>, vector<32x32xbf16>, vector<8x32xf32> -> vector<8x32xf32>
    %c0_4 = arith.constant 0 : index
    %c0_5 = arith.constant 0 : index
    %5 = vector.load %arg4[%c0_4, %c0_5] : memref<1x32xf32, #tpu.memory_space<vmem>>, vector<1x32xf32>
    %6 = vector.shape_cast %5 : vector<1x32xf32> to vector<32xf32>
    %7 = vector.shape_cast %6 : vector<32xf32> to vector<1x32xf32>
    %8 = vector.broadcast %7 : vector<1x32xf32> to vector<8x32xf32>
    %9 = arith.addf %4, %8 : vector<8x32xf32>
    %c0_6 = arith.constant 0 : index
    %c0_7 = arith.constant 0 : index
    %10 = vector.load %arg5[%c0_6, %c0_7] : memref<32x32xbf16, #tpu.memory_space<vmem>>, vector<32x32xbf16>
    %cst_8 = arith.constant dense<0.000000e+00> : vector<8x32xf32>
    %11 = tpu.matmul %2, %10, %cst_8 {dimension_numbers = #tpu.dot_dimension_numbers<[1], [0], [0], [1], [0, 0, 1, 1], [], []>} : vector<8x32xbf16>, vector<32x32xbf16>, vector<8x32xf32> -> vector<8x32xf32>
    %c0_9 = arith.constant 0 : index
    %c0_10 = arith.constant 0 : index
    %12 = vector.load %arg6[%c0_9, %c0_10] : memref<1x32xf32, #tpu.memory_space<vmem>>, vector<1x32xf32>
    %13 = vector.shape_cast %12 : vector<1x32xf32> to vector<32xf32>
    %14 = vector.shape_cast %13 : vector<32xf32> to vector<1x32xf32>
    %15 = vector.broadcast %14 : vector<1x32xf32> to vector<8x32xf32>
    %16 = arith.addf %11, %15 : vector<8x32xf32>
    %c0_11 = arith.constant 0 : index
    %c0_12 = arith.constant 0 : index
    %17 = vector.load %arg7[%c0_11, %c0_12] : memref<32x32xbf16, #tpu.memory_space<vmem>>, vector<32x32xbf16>
    %cst_13 = arith.constant dense<0.000000e+00> : vector<8x32xf32>
    %18 = tpu.matmul %2, %17, %cst_13 {dimension_numbers = #tpu.dot_dimension_numbers<[1], [0], [0], [1], [0, 0, 1, 1], [], []>} : vector<8x32xbf16>, vector<32x32xbf16>, vector<8x32xf32> -> vector<8x32xf32>
    %c0_14 = arith.constant 0 : index
    %c0_15 = arith.constant 0 : index
    %19 = vector.load %arg8[%c0_14, %c0_15] : memref<1x32xf32, #tpu.memory_space<vmem>>, vector<1x32xf32>
    %20 = vector.shape_cast %19 : vector<1x32xf32> to vector<32xf32>
    %21 = vector.shape_cast %20 : vector<32xf32> to vector<1x32xf32>
    %22 = vector.broadcast %21 : vector<1x32xf32> to vector<8x32xf32>
    %23 = arith.addf %18, %22 : vector<8x32xf32>
    %cst_16 = arith.constant 0.353553385 : f32
    %24 = vector.broadcast %cst_16 : f32 to vector<8x32xf32>
    %25 = arith.mulf %9, %24 : vector<8x32xf32>
    %26 = vector.shape_cast %25 : vector<8x32xf32> to vector<8x4x8xf32>
    %27 = tpu.transpose %26, [1, 0, 2] : vector<8x4x8xf32> -> vector<4x8x8xf32>
    %28 = arith.truncf %27 : vector<4x8x8xf32> to vector<4x8x8xbf16>
    %c0_17 = arith.constant 0 : index
    %c0_18 = arith.constant 0 : index
    %c0_19 = arith.constant 0 : index
    %c0_20 = arith.constant 0 : index
    %29 = vector.load %arg9[%c0_17, %c0_18, %c0_19, %c0_20] : memref<1x4x8x8xbf16, #tpu.memory_space<vmem>>, vector<1x4x8x8xbf16>
    %30 = vector.shape_cast %29 : vector<1x4x8x8xbf16> to vector<4x8x8xbf16>
    %31 = vector.shape_cast %28 : vector<4x8x8xbf16> to vector<1x4x8x8xbf16>
    tpu.vector_store %arg9[%c0_17, %c0_18, %c0_19, %c0_20], %31 {strides = array<i32>} : memref<1x4x8x8xbf16, #tpu.memory_space<vmem>>, vector<1x4x8x8xbf16>,
    %32 = vector.shape_cast %16 : vector<8x32xf32> to vector<8x4x8xf32>
    %33 = tpu.transpose %32, [1, 0, 2] : vector<8x4x8xf32> -> vector<4x8x8xf32>
    %34 = arith.truncf %33 : vector<4x8x8xf32> to vector<4x8x8xbf16>
    %c0_21 = arith.constant 0 : index
    %c0_22 = arith.constant 0 : index
    %c0_23 = arith.constant 0 : index
    %c0_24 = arith.constant 0 : index
    %35 = vector.load %arg10[%c0_21, %c0_22, %c0_23, %c0_24] : memref<1x4x8x8xbf16, #tpu.memory_space<vmem>>, vector<1x4x8x8xbf16>
    %36 = vector.shape_cast %35 : vector<1x4x8x8xbf16> to vector<4x8x8xbf16>
    %37 = vector.shape_cast %34 : vector<4x8x8xbf16> to vector<1x4x8x8xbf16>
    tpu.vector_store %arg10[%c0_21, %c0_22, %c0_23, %c0_24], %37 {strides = array<i32>} : memref<1x4x8x8xbf16, #tpu.memory_space<vmem>>, vector<1x4x8x8xbf16>,
    %38 = vector.shape_cast %23 : vector<8x32xf32> to vector<8x4x8xf32>
    %39 = tpu.transpose %38, [1, 0, 2] : vector<8x4x8xf32> -> vector<4x8x8xf32>
    %40 = arith.truncf %39 : vector<4x8x8xf32> to vector<4x8x8xbf16>
    %c0_25 = arith.constant 0 : index
    %c0_26 = arith.constant 0 : index
    %c0_27 = arith.constant 0 : index
    %c0_28 = arith.constant 0 : index
    %41 = vector.load %arg11[%c0_25, %c0_26, %c0_27, %c0_28] : memref<1x4x8x8xbf16, #tpu.memory_space<vmem>>, vector<1x4x8x8xbf16>
    %42 = vector.shape_cast %41 : vector<1x4x8x8xbf16> to vector<4x8x8xbf16>
    %43 = vector.shape_cast %40 : vector<4x8x8xbf16> to vector<1x4x8x8xbf16>
    tpu.vector_store %arg11[%c0_25, %c0_26, %c0_27, %c0_28], %43 {strides = array<i32>} : memref<1x4x8x8xbf16, #tpu.memory_space<vmem>>, vector<1x4x8x8xbf16>,
    return
  }
  func.func @transform_0(%arg0: i32, %arg1: i32) -> (i32, i32, i32) {
    %c0_i32 = arith.constant 0 : i32
    %c0_i32_0 = arith.constant 0 : i32
    return %arg0, %arg1, %c0_i32 : i32, i32, i32
  }
  func.func @transform_1(%arg0: i32, %arg1: i32) -> (i32, i32) {
    %c0_i32 = arith.constant 0 : i32
    %c0_i32_0 = arith.constant 0 : i32
    %c0_i32_1 = arith.constant 0 : i32
    return %c0_i32, %c0_i32_0 : i32, i32
  }
  func.func @transform_2(%arg0: i32, %arg1: i32) -> (i32, i32) {
    %c0_i32 = arith.constant 0 : i32
    %c0_i32_0 = arith.constant 0 : i32
    %c0_i32_1 = arith.constant 0 : i32
    return %c0_i32, %c0_i32_0 : i32, i32
  }
  func.func @transform_3(%arg0: i32, %arg1: i32) -> (i32, i32) {
    %c0_i32 = arith.constant 0 : i32
    %c0_i32_0 = arith.constant 0 : i32
    %c0_i32_1 = arith.constant 0 : i32
    return %c0_i32, %c0_i32_0 : i32, i32
  }
  func.func @transform_4(%arg0: i32, %arg1: i32) -> (i32, i32) {
    %c0_i32 = arith.constant 0 : i32
    %c0_i32_0 = arith.constant 0 : i32
    %c0_i32_1 = arith.constant 0 : i32
    return %c0_i32, %c0_i32_0 : i32, i32
  }
  func.func @transform_5(%arg0: i32, %arg1: i32) -> (i32, i32) {
    %c0_i32 = arith.constant 0 : i32
    %c0_i32_0 = arith.constant 0 : i32
    %c0_i32_1 = arith.constant 0 : i32
    return %c0_i32, %c0_i32_0 : i32, i32
  }
  func.func @transform_6(%arg0: i32, %arg1: i32) -> (i32, i32) {
    %c0_i32 = arith.constant 0 : i32
    %c0_i32_0 = arith.constant 0 : i32
    %c0_i32_1 = arith.constant 0 : i32
    return %c0_i32, %c0_i32_0 : i32, i32
  }
  func.func @transform_7(%arg0: i32, %arg1: i32) -> (i32, i32, i32, i32) {
    %c0_i32 = arith.constant 0 : i32
    %c0_i32_0 = arith.constant 0 : i32
    %c0_i32_1 = arith.constant 0 : i32
    return %arg0, %c0_i32, %arg1, %c0_i32_0 : i32, i32, i32, i32
  }
  func.func @transform_8(%arg0: i32, %arg1: i32) -> (i32, i32, i32, i32) {
    %c0_i32 = arith.constant 0 : i32
    %c0_i32_0 = arith.constant 0 : i32
    %c0_i32_1 = arith.constant 0 : i32
    return %arg0, %c0_i32, %arg1, %c0_i32_0 : i32, i32, i32, i32
  }
  func.func @transform_9(%arg0: i32, %arg1: i32) -> (i32, i32, i32, i32) {
    %c0_i32 = arith.constant 0 : i32
    %c0_i32_0 = arith.constant 0 : i32
    %c0_i32_1 = arith.constant 0 : i32
    return %arg0, %c0_i32, %arg1, %c0_i32_0 : i32, i32, i32, i32
  }
}

</mosaic_0001>

<bundles_post_ra>
// kernel: tpu_custom_call.1
= control target key start
LH: loop header
LB: loop body
LE: loop exit
PB: predicated region body
PF: predicated region fallthrough
CT: control target
= control target key end

     0   :  { %s2225_s0 = inlined_call_operand.hbm [shape: f32[2,8,32], index: 0, kind: input, shape index: {}]   ;;  %s2226_s1 = inlined_call_operand.hbm [shape: bf16[32,32], index: 1, kind: input, shape index: {}]   ;;  %s2227_s2 = inlined_call_operand.vmem [shape: f32[1,32], index: 2, kind: input, shape index: {}]   ;;  %s2228_s3 = inlined_call_operand.hbm [shape: bf16[32,32], index: 3, kind: input, shape index: {}]   ;;  %s2229_s4 = inlined_call_operand.vmem [shape: f32[1,32], index: 4, kind: input, shape index: {}]   ;;  %s2230_s5 = inlined_call_operand.hbm [shape: bf16[32,32], index: 5, kind: input, shape index: {}]   ;;  %s2231_s6 = inlined_call_operand.vmem [shape: f32[1,32], index: 6, kind: input, shape index: {}]   ;;  %s2232_s7 = inlined_call_operand.hbm [shape: bf16[2,4,8,8], index: 7, kind: output, shape index: {0}]   ;;  %s2233_s8 = inlined_call_operand.hbm [shape: bf16[2,4,8,8], index: 8, kind: output, shape index: {1}]   ;;  %s2234_s9 = inlined_call_operand.hbm [shape: bf16[2,4,8,8], index: 9, kind: output, shape index: {2}]  }
   0x1   :  { %2240 = sst [smem:[#allocation21_spill]] %s2226_s1 }
   0x2   :  { %2241 = sst [smem:[#allocation22_spill]] %s2228_s3 }
   0x3   :  { %2242 = sst [smem:[#allocation23_spill]] %s2230_s5 }
   0x4   :  { %15 = vsyncpa [#allocation3], 0 }
   0x5   :  { %17 = vsyncpa [#allocation3 + $0x1], 0 }
   0x6   :  { %18 = vsyncpa [#allocation6], 0 }
   0x7   :  { %19 = vsyncpa [#allocation9], 0 }
   0x8   :  { %20 = vsyncpa [#allocation4], 0 }
   0x9   :  { %22 = vsyncpa [#allocation4 + $0x1], 0 }
   0xa   :  { %23 = vsyncpa [#allocation12], 0 }
   0xb   :  { %25 = vsyncpa [#allocation12 + $0x1], 0  ;;  %s1850_s30 = smov 0   ;;  %s1852_s10 = smov 0  }
   0xc   :  { %s1854_s11 = smov 0   ;;  %s1856_s12 = smov 0  }
   0xd   :  { %s1858_s13 = smov 0   ;;  %s1860_s14 = smov 0  }
   0xe LB: > { %s1881_s15 = sadd.s32 4294967295, %s1780_s14   ;;  %s2236_s16 = sadd.s32 4294967294, %s1780_s14   ;;  %s1780_s14 = sphi %s1860_s14, %s31_s14   ;;  %s1776_s13 = sphi %s1858_s13, %s2269_s13   ;;  %s1772_s12 = sphi %s1856_s12, %s2268_s12   ;;  %s1768_s11 = sphi %s1854_s11, %s2267_s11   ;;  %s1764_s10 = sphi %s1852_s10, %s2266_s10   ;;  %s1760_s30 = sphi %s1850_s30, %s2265_s30  }
   0xf   : > { %p65_p0 = scmp.ne.s32.totalorder %s1764_s10, %s1760_s30  ;;  %p2235_p1 = scmp.eq.s32.totalorder %s1881_s15, 0 }
  0x10   : > { %p223_p3 = scmp.eq.s32.totalorder %s2236_s16, 1  ;;  %p1330_p5 = scmp.ge.s32.totalorder %s1780_s14, 1 }
  0x11   : > { %p1892_p4 = por %p2235_p1, %p65_p0  ;;  %p286_p7 = scmp.lt.s32.totalorder %s1780_s14, 3 }
  0x12   : > { %p1897_p6 = por %p223_p3, %p65_p0  ;;  %s1782_s20 = smov [#allocation5]  }
  0x13   : > { %s2243_s17 = scalar_select %p1892_p4, 1, 0 }
  0x14   : > { %s2244_s18 = scalar_select %p1897_p6, 1, 0 }
  0x15   : > { %p1902_p8 = pnand %p1330_p5, %p286_p7  ;;  %s298_s21 = sshll.u32 %s1782_s20, 4  ;;  %s299_s21 = int_to_ptr.vmem [resolvable:$true] %s298_s21 }
  0x16   : > { %2245 = sst [smem:[#allocation19_spill]] %s2244_s18  ;;  %s1783_s23 = smov [#allocation7]  }
  0x17   : > { %p1430_p9 = pneg %p1902_p8  ;;  %s314_s24 = sshll.u32 %s1783_s23, 4  ;;  %s315_s24 = int_to_ptr.vmem [resolvable:$true] %s314_s24 }
  0x18   : > { %s1784_s25 = smov [#allocation8]   ;;  %s1541_s27 = scalar_lea.vmem %s299_s21, 256 }
  0x19   : > { %p1911_p11 = pnand %p1430_p9, %p2235_p1  ;;  %s330_s26 = sshll.u32 %s1784_s25, 4  ;;  %s331_s26 = int_to_ptr.vmem [resolvable:$true] %s330_s26 }
  0x1a   : > { %p1542_p13 = scmp.ne.s32.totalorder %s299_s21, %s1541_s27  ;;  %p1549_p5 = scmp.lt.s32.totalorder %s299_s21, %s299_s21 }
  0x1b   : > { %p1532_p12 = pneg %p1911_p11  ;;  %p1550_p7 = scmp.lt.s32.totalorder %s1541_s27, %s1541_s27 }
  0x1d   : > { %p1544_p0 = pnand %p1542_p13, %p1532_p12  ;;  %p1551_p9 = por %p1550_p7, %p1549_p5 }
  0x1f   : > { %p1545_p3 = pneg %p1544_p0 }
  0x21   : > { %p1552_p10 = pnand %p1551_p9, %p1545_p3 }
  0x23   : > { %1555 = shalt.err (!%p1552_p10)
}
  0x24   : > { %s1785_s28 = smov 64   ;;  %s1786_s29 = smov 4  }
  0x25   : > { %s2248_s1 = sld [smem:[#allocation21_spill]]  ;;  %s1567_s25 = scalar_lea.vmem %s315_s24, 256 }
  0x26   : > { %p1568_p1 = scmp.ne.s32.totalorder %s315_s24, %s1567_s25  ;;  %p1575_p2 = scmp.lt.s32.totalorder %s315_s24, %s315_s24 }
  0x27   : > { %p1576_p6 = scmp.lt.s32.totalorder %s1567_s25, %s1567_s25 }
  0x28   : > { %p1570_p13 = pnand %p1568_p1, %p1532_p12 }
  0x29   : > { %p1577_p5 = por %p1576_p6, %p1575_p2 }
  0x2a   : > { %p1571_p0 = pneg %p1570_p13 }
  0x2b   : > { %1433 = dma.hbm_to_vmem [thread:$0]  (!%p1911_p11), %s2248_s1, 256, %s299_s21, [#allocation6], %s1785_s28, %s1785_s28, %s1786_s29  }
  0x2c   : > { %p1578_p3 = pnand %p1577_p5, %p1571_p0 }
  0x2e   : > { %1581 = shalt.err (!%p1578_p3)
}
  0x2f   : > { %s2249_s3 = sld [smem:[#allocation22_spill]]  ;;  %s1593_s21 = scalar_lea.vmem %s331_s26, 256 }
  0x30   : > { %p1594_p10 = scmp.ne.s32.totalorder %s331_s26, %s1593_s21  ;;  %p1601_p9 = scmp.lt.s32.totalorder %s331_s26, %s331_s26 }
  0x31   : > { %p1602_p13 = scmp.lt.s32.totalorder %s1593_s21, %s1593_s21 }
  0x32   : > { %p1596_p7 = pnand %p1594_p10, %p1532_p12 }
  0x33   : > { %p1603_p4 = por %p1602_p13, %p1601_p9 }
  0x34   : > { %p1597_p1 = pneg %p1596_p7 }
  0x35   : > { %1436 = dma.hbm_to_vmem [thread:$0]  (!%p1911_p11), %s2249_s3, 256, %s315_s24, [#allocation6], %s1785_s28, %s1785_s28, %s1786_s29  }
  0x36   : > { %p1604_p2 = pnand %p1603_p4, %p1597_p1 }
  0x38   : > { %1607 = shalt.err (!%p1604_p2)
}
  0x39   : > { %s2250_s5 = sld [smem:[#allocation23_spill]]  ;;  %s52_s16 = sadd.s32 1, %s1768_s11 }
  0x3a   : > { %s43_s24 = sadd.s32 1, %s1776_s13  ;;  %p59_p4 = scmp.ne.s32.totalorder %s1768_s11, %s1764_s10 }
  0x3b   : > { %p45_p6 = scmp.ge.s32.totalorder %s43_s24, 2  ;;  %p60_p12 = scmp.eq.s32.totalorder %s1780_s14, 0 }
  0x3c   : > { %p2251_p0 = scmp.eq.s32.totalorder %s1881_s15, 1  ;;  %p1457_p3 = scmp.lt.s32.totalorder %s1780_s14, 2 }
  0x3d   : > { %s2271_s24 = smov (%p45_p6, %s43_s24), 0  ;;  %p61_p10 = por %p60_p12, %p59_p4 }
  0x3e   : > { %p1948_p5 = por %p2251_p0, %p59_p4  ;;  %2253 = sst [smem:[#allocation20_spill]] %s2271_s24 }
  0x3f   : > { %1439 = dma.hbm_to_vmem [thread:$0]  (!%p1911_p11), %s2250_s5, 256, %s331_s26, [#allocation9], %s1785_s28, %s1785_s28, %s1786_s29  }
  0x40   : > { %s347_s25 = sand.u32 1, %s1768_s11   ;;  %s47_s27 = ssub.s32 %s1776_s13, %s2271_s24 }
  0x41   : > { %p50_p7 = scmp.eq.s32.totalorder %s47_s27, 0  ;;  %s1335_s26 = sshll.u32 %s347_s25, 3 }
  0x42   : > { %s1336_s28 = sshll.u32 %s1776_s13, 7  ;;  %s351_s1 = scalar_lea.vmem [#allocation2], %s1335_s26 }
  0x43   : > { %s1960_s29 = scalar_select %p50_p7, %s1768_s11, %s52_s16  }
  0x44   : > { %s357_s23 = scalar_lea.hbm %s2225_s0, %s1336_s28  ;;  %s359_s3 = sshll.u32 %s351_s1, 4  ;;  %s360_s3 = int_to_ptr.vmem [resolvable:$true] %s359_s3 }
  0x45   : > { %p1967_p11 = pnand %p1457_p3, %p61_p10  ;;  %s348_s18 = scalar_lea.sflag [#allocation3], %s347_s25 }
  0x46   : > { %s1621_s27 = scalar_lea.vmem %s360_s3, 128  ;;  %s1787_s16 = smov [#allocation2]  }
  0x47   : > { %p1610_p1 = pneg %p1967_p11  ;;  %p1622_p9 = scmp.ne.s32.totalorder %s360_s3, %s1621_s27 }
  0x48   : > { %s1626_s24 = sshll.u32 %s1787_s16, 4  ;;  %s1627_s24 = int_to_ptr.vmem [resolvable:$false] %s1626_s24 }
  0x49   : > { %p1624_p13 = pnand %p1622_p9, %p1610_p1  ;;  %s1628_s28 = scalar_lea.vmem %s1627_s24, 256 }
  0x4a   : > { %p1629_p4 = scmp.lt.s32.totalorder %s360_s3, %s1627_s24  ;;  %p1630_p6 = scmp.lt.s32.totalorder %s1628_s28, %s1621_s27 }
  0x4b   : > { %p1625_p2 = pneg %p1624_p13 }
  0x4c   : > { %p1631_p12 = por %p1630_p6, %p1629_p4 }
  0x4e   : > { %p1632_p0 = pnand %p1631_p12, %p1625_p2 }
  0x50   : > { %1635 = shalt.err (!%p1632_p0)
}
  0x51   : > { %1443 = dma.hbm_to_vmem [thread:$0]  (!%p1967_p11), %s357_s23, 128, %s360_s3, %s348_s18  }
  0x52   : > { %368 = sbr.rel (%p1902_p8) target bundleno = 502 (0x1f6), region = 48  ;;  %s1978_s1 = sand.u32 (!%p1902_p8), 1, %s1764_s10  }
  0x53   : > { %s1338_s25 = sshll.u32 (!%p1902_p8), %s1978_s1, 3  ;;  %s371_s26 = scalar_lea.sflag (!%p1902_p8), [#allocation3], %s1978_s1 }
  0x54   : > { %s374_s21 = scalar_lea.vmem (!%p1902_p8), [#allocation2], %s1338_s25  ;;  %p2255_p3 = scmp.ne.s32.totalorder (!%p1902_p8), %s2243_s17, 0 }
  0x57   : > { %1739 = dma.done.wait (%p2255_p3), %s371_s26, 128  }
  0x58   : > { %1741 = vsyncadd (%p2255_p3), %s371_s26, 4294967168  ;;  %p2256_p10 = scmp.eq.s32.totalorder %s1881_s15, 0 }
  0x5a   : > { %1743 = dma.done.wait (%p2256_p10), [#allocation6], 512   ;;  %p2257_p7 = pmov %p2256_p10 }
  0x5c   : > { %1745 = vsyncadd (%p2257_p7), [#allocation6], 4294966784  ;;  %p2258_p8 = pmov %p2257_p7 }
  0x5d   : > { %p2259_p11 = pmov %p2257_p7 }
  0x5e   : > { %1747 = dma.done.wait (%p2258_p8), [#allocation9], 256  }
  0x5f   : > { %1749 = vsyncadd (%p2259_p11), [#allocation9], 4294967040  ;;  %v1788_v0 = vmov 0.0   ;;  %vm1789_vm0 = vmmov 0   ;;  %v1524_v1 = vld [vmem:[#allocation5 + $0x8] sm:$0xff]   ;;  %v1525_v2 = vld [vmem:[#allocation7 + $0x8] sm:$0xff]   ;;  %v643_v30 = vlaneseq }
  0x60   : > { %1386 = vmatprep.subr.bf16.mxu0 %v1788_v0  ;;  %1394 = vmatprep.subr.bf16.mxu1 %v1788_v0  ;;  %v1526_v3 = vld [vmem:[#allocation5] sm:$0xff]   ;;  %v1527_v4 = vld [vmem:[#allocation7] sm:$0xff]   ;;  %vm457_vm1 = vcmask 261120   ;;  %v1528_v7 = vld [vmem:[#allocation8 + $0x8] sm:$0xff]   ;;  %s1790_s19 = smov 104   ;;  %s1791_s24 = smov 120  }
  0x61   : > { %1390 = vmatprep.mubr.msk.bf16.mxu0 %vm1789_vm0, %v1788_v0  ;;  %1398 = vmatprep.mubr.msk.bf16.mxu1 %vm1789_vm0, %v1788_v0  ;;  %v432_v5 = vld [vmem:[%s374_s21] sm:$0xff]  ;;  %v1529_v8 = vld [vmem:[#allocation8] sm:$0xff]   ;;  %s1792_s20 = smov 112   ;;  %v1793_v28 = vmov 1983009808   ;;  %v644_v34 = vshrl.u32 %v643_v30, 7 }
  0x62   : > { %1387 = vmatpush3.bf16.msra.mxu0 %v1524_v1  ;;  %1395 = vmatpush3.bf16.msra.mxu1 %v1525_v2  ;;  %v433_v6 = vpack.c.bf16 %v432_v5, %v432_v5  ;;  %v1345_v9 = vld [vmem:[%s2227_s2] ss:$0 sm:$0xff]  ;;  %v641_v29 = vunpack.c.l.s4 %v1793_v28  ;;  %v1794_v31 = vmov 1934713408   ;;  %vm778_vm2 = vcmask 60416   ;;  %s2038_s16 = sshll.u32 %s1978_s1, 4 }
  0x63   : > { %1388 = vmatprep.subr.bf16.mxu0 %v1788_v0  ;;  %1396 = vmatprep.subr.bf16.mxu1 %v1788_v0  ;;  %v1349_v10 = vld [vmem:[%s2229_s4] ss:$0 sm:$0xff]  ;;  %v673_v32 = vunpack.c.l.s4 %v1794_v31  ;;  %s1096_s28 = sand.u32 1, %s1881_s15   ;;  %s2050_s25 = sshll.u32 %s1772_s12, 8 }
  0x64   : > { %v1353_v23 = vld [vmem:[%s2231_s6] ss:$0 sm:$0xff]  ;;  %v642_v33 = vunpack.c.0.s8 %v641_v29  ;;  %s423_s26 = scalar_lea.vmem [#allocation11], %s2038_s16  ;;  %s2057_s5 = scalar_lea.hbm %s2233_s8, %s2050_s25 }
  0x65   : > { %v674_v37 = vunpack.c.0.s8 %v673_v32  ;;  %s1133_s21 = sshll.u32 %s423_s26, 4  ;;  %s2074_s17 = scalar_lea.vmem [#allocation10], %s2038_s16  ;;  %s2059_s21 = int_to_ptr.vmem [resolvable:$true] %s1133_s21 }
  0x66   : > { %1389 = vmatpush3.bf16.msra.mxu0 %v1526_v3  ;;  %1397 = vmatpush3.bf16.msra.mxu1 %v1527_v4  ;;  %v2011_v38 = vsub.s32 %v642_v33, %v644_v34  ;;  %s1116_s18 = sshll.u32 %s2074_s17, 4  ;;  %s2117_s18 = int_to_ptr.vmem [resolvable:$true] %s1116_s18 }
  0x67   : > { %1402 = vmatprep.subr.bf16.mxu0 %v1788_v0  ;;  %v2013_v45 = vsub.s32 %v674_v37, %v644_v34 }
  0x69   : > { %1391 = vmatmul.mubr.msk.bf16.vlgmr.msra.gmra.mxu0 %vm457_vm1, %v433_v6  ;;  %1399 = vmatmul.mubr.msk.bf16.vlgmr.msra.gmra.mxu1 %vm457_vm1, %v433_v6 }
  0x6a   : > { %1403 = vmatpush3.bf16.msra.mxu0 %v1528_v7  ;;  %1406 = vmatprep.mubr.msk.bf16.mxu0 %vm1789_vm0, %v1788_v0 }
  0x6b   : > { %1404 = vmatprep.subr.bf16.mxu0 %v1788_v0 }
  0x6e   : > { %1405 = vmatpush3.bf16.msra.mxu0 %v1529_v8 }
  0x71   : > { %1407 = vmatmul.mubr.msk.bf16.vlgmr.msra.gmra.mxu0 %vm457_vm1, %v433_v6 }
 0x129   : > { %v495_v11 = vpop.f32.mrf.mxu0  ;;  %v558_v13 = vpop.f32.mrf.mxu1 }
 0x12a   : > { %v496_v12 = vadd.f32 %v1345_v9, %v495_v11  ;;  %v559_v14 = vadd.f32 %v1349_v10, %v558_v13 }
 0x12b   : > { %v1392_v15 = vpop.f32.mrf.mxu0  ;;  %v1400_v16 = vpop.f32.mrf.mxu1 }
 0x12c   : > { %v627_v17 = vmul.f32 0.35355338, %v496_v12  ;;  %790 = vrot.lane.b32.xlu1 %v559_v14, %s1790_s19  ;;  %784 = vrot.lane.b32.xlu0 %v559_v14, %s1791_s24 }
 0x12d   : > { %v498_v18 = vpop.f32.mrf.mxu0  ;;  %v561_v19 = vpop.f32.mrf.mxu1 }
 0x12f   : > { %v1393_v20 = vpop.f32.mrf.mxu0  ;;  %v1401_v21 = vpop.f32.mrf.mxu1 }
 0x130   : > { %787 = vrot.lane.b32.xlu0 %v559_v14, %s1792_s20  ;;  %629 = vrot.lane.b32.xlu1 %v627_v17, %s1791_s24 }
 0x131   : > { %v621_v22 = vpop.f32.mrf.mxu0 }
 0x132   : > { %v2006_v25 = vadd.f32 %v1353_v23, %v621_v22 }
 0x133   : > { %v1408_v24 = vpop.f32.mrf.mxu0 }
 0x134   : > { %632 = vrot.lane.b32.xlu0 %v627_v17, %s1792_s20  ;;  %635 = vrot.lane.b32.xlu1 %v627_v17, %s1790_s19 }
 0x135   : > { %v624_v26 = vpop.f32.mrf.mxu0 }
 0x137   : > { %v1409_v27 = vpop.f32.mrf.mxu0 }
 0x138   : > { %941 = vrot.lane.b32.xlu1 %v2006_v25, %s1792_s20  ;;  %938 = vrot.lane.b32.xlu0 %v2006_v25, %s1791_s24  ;;  %s1636_s24 = scalar_lea.vmem %s2059_s21, 256  ;;  %s1795_s20 = smov [#allocation11]  }
 0x139   : > { %p1637_p1 = scmp.ne.s32.totalorder %s2059_s21, %s1636_s24  ;;  %s1640_s23 = sshll.u32 %s1795_s20, 4  ;;  %s1641_s23 = int_to_ptr.vmem [resolvable:$false] %s1640_s23 }
 0x13a   : > { %s1642_s27 = scalar_lea.vmem %s1641_s23, 512  ;;  %p1643_p2 = scmp.lt.s32.totalorder %s2059_s21, %s1641_s23 }
 0x13b   : > { %p1638_p9 = pnand %p1637_p1, %p1948_p5  ;;  %p1644_p4 = scmp.lt.s32.totalorder %s1642_s27, %s1636_s24 }
 0x13c   : > { %944 = vrot.lane.b32.xlu0 %v2006_v25, %s1790_s19  ;;  %s2079_s19 = scalar_lea.sflag [#allocation12], %s1096_s28 }
 0x13d   : > { %p1639_p13 = pneg %p1638_p9  ;;  %p1645_p6 = por %p1644_p4, %p1643_p2 }
 0x13f   : > { %p1646_p12 = pnand %p1645_p6, %p1639_p13 }
 0x19e   : > { %v791_v35 = vpop.permute.xlu1 %790  ;;  %v785_v36 = vpop.permute.xlu0 %784 }
 0x19f   : > { %v809_v39 = vcombine.low %v785_v36, %v791_v35  ;;  %v810_v40 = vcombine.high %v785_v36, %v791_v35 }
 0x1a1   : > { %v817_v46 = vrot.slane %v809_v39, %v2011_v38  ;;  %v824_v47 = vrot.slane %v810_v40, %v2011_v38 }
 0x1a2   : > { %v788_v41 = vpop.permute.xlu0 %787  ;;  %v630_v42 = vpop.permute.xlu1 %629 }
 0x1a3   : > { %v793_v43 = vcombine.low %v559_v14, %v788_v41  ;;  %v794_v44 = vcombine.high %v559_v14, %v788_v41 }
 0x1a5   : > { %v801_v48 = vrot.slane %v793_v43, %v2011_v38  ;;  %v808_v49 = vrot.slane %v794_v44, %v2011_v38 }
 0x1a6   : > { %v633_v50 = vpop.permute.xlu0 %632  ;;  %v636_v51 = vpop.permute.xlu1 %635 }
 0x1a7   : > { %v825_v52 = vcombine.low %v801_v48, %v817_v46  ;;  %v826_v53 = vcombine.high %v801_v48, %v817_v46  ;;  %v841_v54 = vcombine.low %v808_v49, %v824_v47  ;;  %v842_v55 = vcombine.high %v808_v49, %v824_v47 }
 0x1a8   : > { %v638_v56 = vcombine.low %v627_v17, %v633_v50  ;;  %v639_v57 = vcombine.high %v627_v17, %v633_v50  ;;  %v654_v58 = vcombine.low %v630_v42, %v636_v51  ;;  %v655_v59 = vcombine.high %v630_v42, %v636_v51 }
 0x1a9   : > { %v833_v60 = vrot.slane %v825_v52, %v2013_v45  ;;  %v840_v61 = vrot.slane %v826_v53, %v2013_v45  ;;  %v849_v62 = vrot.slane %v841_v54, %v2013_v45  ;;  %v856_v63 = vrot.slane %v842_v55, %v2013_v45 }
 0x1aa   : > { %v646_v0 = vrot.slane %v638_v56, %v2011_v38  ;;  %v653_v1 = vrot.slane %v639_v57, %v2011_v38  ;;  %v662_v2 = vrot.slane %v654_v58, %v2011_v38  ;;  %v669_v3 = vrot.slane %v655_v59, %v2011_v38  ;;  %v2035_v20 = vpop.permute.xlu0 %938  ;;  %v942_v48 = vpop.permute.xlu1 %941 }
 0x1ab   : > { %v861_v4 = vcombine.low %v833_v60, %v840_v61  ;;  %v1359_v5 = vcombine.high %v833_v60, %v840_v61  ;;  %v877_v6 = vcombine.low %v849_v62, %v856_v63  ;;  %v1360_v7 = vcombine.high %v849_v62, %v856_v63 }
 0x1ac   : > { %v670_v8 = vcombine.low %v646_v0, %v662_v2  ;;  %v671_v9 = vcombine.high %v646_v0, %v662_v2  ;;  %v686_v10 = vcombine.low %v653_v1, %v669_v3  ;;  %v687_v11 = vcombine.high %v653_v1, %v669_v3 }
 0x1ad   : > { %v868_v12 = vrot.slane %v861_v4, %v2011_v38  ;;  %v876_v13 = vrot.slane %v1359_v5, %v2011_v38  ;;  %v884_v14 = vrot.slane %v877_v6, %v2011_v38  ;;  %v892_v15 = vrot.slane %v1360_v7, %v2011_v38 }
 0x1ae   : > { %v678_v16 = vrot.slane %v670_v8, %v2013_v45  ;;  %v685_v17 = vrot.slane %v671_v9, %v2013_v45  ;;  %v694_v18 = vrot.slane %v686_v10, %v2013_v45  ;;  %v701_v19 = vrot.slane %v687_v11, %v2013_v45  ;;  %v945_v49 = vpop.permute.xlu0 %944 }
 0x1af   : > { %v893_v21 = vcombine.low %v868_v12, %v876_v13  ;;  %v894_v22 = vcombine.high %v868_v12, %v876_v13  ;;  %v909_v23 = vcombine.low %v884_v14, %v892_v15  ;;  %v910_v24 = vcombine.high %v884_v14, %v892_v15 }
 0x1b0   : > { %v706_v26 = vcombine.low %v678_v16, %v685_v17  ;;  %v1357_v27 = vcombine.high %v678_v16, %v685_v17  ;;  %v722_v28 = vcombine.low %v694_v18, %v701_v19  ;;  %v1358_v29 = vcombine.high %v694_v18, %v701_v19 }
 0x1b1   : > { %v901_v30 = vrot.slane %v893_v21, %v2013_v45  ;;  %v908_v31 = vrot.slane %v894_v22, %v2013_v45  ;;  %v917_v32 = vrot.slane %v909_v23, %v2013_v45  ;;  %v924_v33 = vrot.slane %v910_v24, %v2013_v45 }
 0x1b2   : > { %v713_v34 = vrot.slane %v706_v26, %v2011_v38  ;;  %v721_v35 = vrot.slane %v1357_v27, %v2011_v38  ;;  %v729_v36 = vrot.slane %v722_v28, %v2011_v38  ;;  %v737_v37 = vrot.slane %v1358_v29, %v2011_v38 }
 0x1b3   : > { %v925_v39 = vcombine.low %v901_v30, %v917_v32  ;;  %v926_v40 = vcombine.high %v901_v30, %v917_v32  ;;  %v927_v41 = vcombine.low %v908_v31, %v924_v33  ;;  %v928_v42 = vcombine.high %v908_v31, %v924_v33 }
 0x1b4   : > { %v738_v43 = vcombine.low %v713_v34, %v721_v35  ;;  %v739_v44 = vcombine.high %v713_v34, %v721_v35  ;;  %v754_v46 = vcombine.low %v729_v36, %v737_v37  ;;  %v755_v47 = vcombine.high %v729_v36, %v737_v37 }
 0x1b5   : > { %v929_v50 = vpack.c.bf16 %v925_v39, %v925_v39  ;;  %v930_v51 = vpack.c.bf16 %v926_v40, %v926_v40  ;;  %v931_v52 = vpack.c.bf16 %v927_v41, %v927_v41  ;;  %v932_v53 = vpack.c.bf16 %v928_v42, %v928_v42 }
 0x1b6   : > { %v746_v54 = vrot.slane %v738_v43, %v2013_v45  ;;  %v753_v55 = vrot.slane %v739_v44, %v2013_v45  ;;  %v762_v56 = vrot.slane %v754_v46, %v2013_v45  ;;  %v769_v57 = vrot.slane %v755_v47, %v2013_v45 }
 0x1b7   : > { %v947_v58 = vcombine.low %v2006_v25, %v942_v48  ;;  %v948_v59 = vcombine.high %v2006_v25, %v942_v48  ;;  %v963_v60 = vcombine.low %v2035_v20, %v945_v49  ;;  %v964_v61 = vcombine.high %v2035_v20, %v945_v49  ;;  %933 = vst.msk [vmem:[%s423_s26] sm:$0xf] %vm778_vm2, %v929_v50 }
 0x1b8   : > { %934 = vst.msk [vmem:[%s423_s26 + $0x4] sm:$0xf] %vm778_vm2, %v930_v51  ;;  %935 = vst.msk [vmem:[%s423_s26 + $0x8] sm:$0xf] %vm778_vm2, %v931_v52  ;;  %v770_v62 = vcombine.low %v746_v54, %v762_v56  ;;  %v771_v25 = vcombine.high %v746_v54, %v762_v56  ;;  %v772_v63 = vcombine.low %v753_v55, %v769_v57 }
 0x1b9   : > { %936 = vst.msk [vmem:[%s423_s26 + $0xc] sm:$0xf] %vm778_vm2, %v932_v53  ;;  %v773_v0 = vcombine.high %v753_v55, %v769_v57 }
 0x1ba   : > { %1649 = shalt.err (!%p1646_p12)
}
 0x1bb   : > { %s1650_s15 = scalar_lea.hbm %s2057_s5, 256  ;;  %s1654_s12 = scalar_lea.hbm %s2233_s8, 512 }
 0x1bc   : > { %p1651_p0 = scmp.ne.s32.totalorder %s2057_s5, %s1650_s15  ;;  %p1655_p7 = scmp.lt.s32.totalorder %s2057_s5, %s2233_s8 }
 0x1bd   : > { %p1656_p8 = scmp.lt.s32.totalorder %s1654_s12, %s1650_s15 }
 0x1be   : > { %p1652_p3 = pnand %p1651_p0, %p1948_p5 }
 0x1bf   : > { %p1657_p11 = por %p1656_p8, %p1655_p7 }
 0x1c0   : > { %p1653_p10 = pneg %p1652_p3 }
 0x1c2   : > { %p1658_p1 = pnand %p1657_p11, %p1653_p10 }
 0x1c4   : > { %1661 = shalt.err (!%p1658_p1)
}
 0x1c5   : > { %s1796_s24 = smov 64   ;;  %s1797_s23 = smov 4   ;;  %v955_v1 = vrot.slane %v947_v58, %v2011_v38  ;;  %v962_v2 = vrot.slane %v948_v59, %v2011_v38  ;;  %v971_v3 = vrot.slane %v963_v60, %v2011_v38  ;;  %v978_v4 = vrot.slane %v964_v61, %v2011_v38 }
 0x1c6   : > { %1425 = dma.vmem_to_hbm [thread:$0]  (%p1948_p5), %s2059_s21, 256, %s2057_s5, %s2079_s19, %s1796_s24, %s1796_s24, %s1797_s23   ;;  %v774_v5 = vpack.c.bf16 %v770_v62, %v770_v62  ;;  %v775_v6 = vpack.c.bf16 %v771_v25, %v771_v25  ;;  %v776_v7 = vpack.c.bf16 %v772_v63, %v772_v63  ;;  %v777_v8 = vpack.c.bf16 %v773_v0, %v773_v0 }
 0x1c7   : > { %s2113_s21 = scalar_lea.hbm %s2232_s7, %s2050_s25  ;;  %v979_v9 = vcombine.low %v955_v1, %v971_v3  ;;  %v980_v10 = vcombine.high %v955_v1, %v971_v3  ;;  %v995_v11 = vcombine.low %v962_v2, %v978_v4  ;;  %v996_v12 = vcombine.high %v962_v2, %v978_v4  ;;  %s1092_s5 = scalar_lea.sflag [#allocation4], %s1978_s1 }
 0x1c8   : > { %779 = vst.msk [vmem:[%s2074_s17] sm:$0xf] %vm778_vm2, %v774_v5  ;;  %780 = vst.msk [vmem:[%s2074_s17 + $0x4] sm:$0xf] %vm778_vm2, %v775_v6  ;;  %s1662_s28 = scalar_lea.vmem %s2117_s18, 256  ;;  %s1798_s26 = smov [#allocation10]  }
 0x1c9   : > { %781 = vst.msk [vmem:[%s2074_s17 + $0x8] sm:$0xf] %vm778_vm2, %v776_v7  ;;  %782 = vst.msk [vmem:[%s2074_s17 + $0xc] sm:$0xf] %vm778_vm2, %v777_v8  ;;  %v987_v13 = vrot.slane %v979_v9, %v2013_v45  ;;  %v994_v14 = vrot.slane %v980_v10, %v2013_v45  ;;  %v1003_v15 = vrot.slane %v995_v11, %v2013_v45  ;;  %p1663_p9 = scmp.ne.s32.totalorder %s2117_s18, %s1662_s28  ;;  %s1666_s12 = sshll.u32 %s1798_s26, 4  ;;  %s1667_s12 = int_to_ptr.vmem [resolvable:$false] %s1666_s12 }
 0x1ca   : > { %v1010_v16 = vrot.slane %v996_v12, %v2013_v45  ;;  %s1668_s3 = scalar_lea.vmem %s1667_s12, 512  ;;  %p1669_p4 = scmp.lt.s32.totalorder %s2117_s18, %s1667_s12 }
 0x1cb   : > { %p1664_p13 = pnand %p1663_p9, %p1948_p5  ;;  %p1670_p6 = scmp.lt.s32.totalorder %s1668_s3, %s1662_s28 }
 0x1cd   : > { %p1665_p2 = pneg %p1664_p13  ;;  %p1671_p12 = por %p1670_p6, %p1669_p4 }
 0x1cf   : > { %p1672_p0 = pnand %p1671_p12, %p1665_p2 }
 0x1d1   : > { %1675 = shalt.err (!%p1672_p0)
}
 0x1d2   : > { %s1676_s17 = scalar_lea.hbm %s2113_s21, 256  ;;  %s1680_s27 = scalar_lea.hbm %s2232_s7, 512 }
 0x1d3   : > { %p1677_p3 = scmp.ne.s32.totalorder %s2113_s21, %s1676_s17  ;;  %p1681_p8 = scmp.lt.s32.totalorder %s2113_s21, %s2232_s7 }
 0x1d4   : > { %p1682_p11 = scmp.lt.s32.totalorder %s1680_s27, %s1676_s17 }
 0x1d5   : > { %p1678_p10 = pnand %p1677_p3, %p1948_p5 }
 0x1d6   : > { %p1683_p1 = por %p1682_p11, %p1681_p8 }
 0x1d7   : > { %p1679_p7 = pneg %p1678_p10 }
 0x1d9   : > { %p1684_p9 = pnand %p1683_p1, %p1679_p7 }
 0x1db   : > { %1687 = shalt.err (!%p1684_p9)
}
 0x1dc   : > { %1424 = dma.vmem_to_hbm [thread:$0]  (%p1948_p5), %s2117_s18, 256, %s2113_s21, %s1092_s5, %s1796_s24, %s1796_s24, %s1797_s23   ;;  %v1015_v17 = vcombine.low %v987_v13, %v994_v14  ;;  %v1361_v18 = vcombine.high %v987_v13, %v994_v14  ;;  %v1031_v19 = vcombine.low %v1003_v15, %v1010_v16  ;;  %v1362_v20 = vcombine.high %v1003_v15, %v1010_v16 }
 0x1dd   : > { %s430_s18 = scalar_lea.vmem [#allocation13], %s2038_s16  ;;  %s2168_s12 = scalar_lea.hbm %s2234_s9, %s2050_s25 }
 0x1de   : > { %v1022_v21 = vrot.slane %v1015_v17, %v2011_v38  ;;  %v1030_v22 = vrot.slane %v1361_v18, %v2011_v38  ;;  %v1038_v23 = vrot.slane %v1031_v19, %v2011_v38  ;;  %v1046_v24 = vrot.slane %v1362_v20, %v2011_v38  ;;  %s1150_s21 = sshll.u32 %s430_s18, 4  ;;  %s1799_s25 = smov [#allocation13]   ;;  %s2170_s21 = int_to_ptr.vmem [resolvable:$true] %s1150_s21 }
 0x1df   : > { %s1688_s16 = scalar_lea.vmem %s2170_s21, 256  ;;  %s1692_s3 = sshll.u32 %s1799_s25, 4  ;;  %s1693_s3 = int_to_ptr.vmem [resolvable:$false] %s1692_s3 }
 0x1e0   : > { %v1047_v26 = vcombine.low %v1022_v21, %v1030_v22  ;;  %v1048_v27 = vcombine.high %v1022_v21, %v1030_v22  ;;  %v1063_v28 = vcombine.low %v1038_v23, %v1046_v24  ;;  %v1064_v29 = vcombine.high %v1038_v23, %v1046_v24  ;;  %p1689_p13 = scmp.ne.s32.totalorder %s2170_s21, %s1688_s16  ;;  %s1694_s17 = scalar_lea.vmem %s1693_s3, 512 }
 0x1e1   : > { %p1695_p6 = scmp.lt.s32.totalorder %s2170_s21, %s1693_s3  ;;  %p1696_p12 = scmp.lt.s32.totalorder %s1694_s17, %s1688_s16 }
 0x1e2   : > { %v1055_v30 = vrot.slane %v1047_v26, %v2013_v45  ;;  %v1062_v31 = vrot.slane %v1048_v27, %v2013_v45  ;;  %v1071_v32 = vrot.slane %v1063_v28, %v2013_v45  ;;  %v1078_v33 = vrot.slane %v1064_v29, %v2013_v45  ;;  %p1690_p2 = pnand %p1689_p13, %p1948_p5 }
 0x1e3   : > { %p1697_p0 = por %p1696_p12, %p1695_p6 }
 0x1e4   : > { %v1079_v34 = vcombine.low %v1055_v30, %v1071_v32  ;;  %v1080_v35 = vcombine.high %v1055_v30, %v1071_v32  ;;  %v1081_v36 = vcombine.low %v1062_v31, %v1078_v33  ;;  %v1082_v38 = vcombine.high %v1062_v31, %v1078_v33  ;;  %p1691_p4 = pneg %p1690_p2 }
 0x1e6   : > { %v1083_v37 = vpack.c.bf16 %v1079_v34, %v1079_v34  ;;  %v1084_v39 = vpack.c.bf16 %v1080_v35, %v1080_v35  ;;  %v1085_v40 = vpack.c.bf16 %v1081_v36, %v1081_v36  ;;  %v1086_v41 = vpack.c.bf16 %v1082_v38, %v1082_v38  ;;  %p1698_p3 = pnand %p1697_p0, %p1691_p4 }
 0x1e8   : > { %1087 = vst.msk [vmem:[%s430_s18] sm:$0xf] %vm778_vm2, %v1083_v37  ;;  %1088 = vst.msk [vmem:[%s430_s18 + $0x4] sm:$0xf] %vm778_vm2, %v1084_v39 }
 0x1e9   : > { %1089 = vst.msk [vmem:[%s430_s18 + $0x8] sm:$0xf] %vm778_vm2, %v1085_v40  ;;  %1090 = vst.msk [vmem:[%s430_s18 + $0xc] sm:$0xf] %vm778_vm2, %v1086_v41 }
 0x1ea   : > { %1701 = shalt.err (!%p1698_p3)
}
 0x1eb   : > { %s1702_s1 = scalar_lea.hbm %s2168_s12, 256  ;;  %s1706_s15 = scalar_lea.hbm %s2234_s9, 512 }
 0x1ec   : > { %p1703_p10 = scmp.ne.s32.totalorder %s2168_s12, %s1702_s1  ;;  %p1707_p11 = scmp.lt.s32.totalorder %s2168_s12, %s2234_s9 }
 0x1ed   : > { %p1708_p1 = scmp.lt.s32.totalorder %s1706_s15, %s1702_s1 }
 0x1ee   : > { %p1704_p7 = pnand %p1703_p10, %p1948_p5 }
 0x1ef   : > { %p1709_p9 = por %p1708_p1, %p1707_p11 }
 0x1f0   : > { %p1705_p8 = pneg %p1704_p7 }
 0x1f2   : > { %p1710_p13 = pnand %p1709_p9, %p1705_p8 }
 0x1f4   : > { %1713 = shalt.err (!%p1710_p13)
}
 0x1f5   : > { %1426 = dma.vmem_to_hbm [thread:$0]  (%p1948_p5), %s2170_s21, 256, %s2168_s12, %s2079_s19, %s1796_s24, %s1796_s24, %s1797_s23  }
 0x1f6 PF: > { %s2260_s5 = sld [smem:[#allocation19_spill]]  ;;  %s1165_s28 = sand.u32 1, %s1760_s30  }
 0x1f7   : > { %p2262_p4 = scmp.ge.s32.totalorder %s1780_s14, 2  ;;  %s1166_s16 = scalar_lea.sflag [#allocation4], %s1165_s28 }
 0x1fc   : > { %p2261_p2 = scmp.ne.s32.totalorder %s2260_s5, 0 }
 0x1fe   : > { %p1445_p6 = pnand %p2262_p4, %p2261_p2 }
 0x200   : > { %p1446_p12 = pneg %p1445_p6 }
 0x202   : > { %1751 = dma.done.wait (%p1446_p12), %s1166_s16, 256  }
 0x203   : > { %1753 = vsyncadd (%p1446_p12), %s1166_s16, 4294967040  ;;  %s2263_s22 = sadd.s32 4294967294, %s1780_s14  }
 0x204   : > { %s1174_s25 = sand.u32 1, %s2263_s22  }
 0x205   : > { %s1175_s3 = scalar_lea.sflag [#allocation12], %s1174_s25 }
 0x206   : > { %1755 = dma.done.wait (%p1446_p12), %s1175_s3, 512  }
 0x207   : > { %1757 = vsyncadd (%p1446_p12), %s1175_s3, 4294966784  ;;  %s31_s14 = sadd.s32 1, %s1780_s14   ;;  %s2264_s19 = sld [smem:[#allocation20_spill]] }
 0x208   : > { %p28_p5 = scmp.ge.s32.totalorder %s31_s14, 4   ;;  %s2265_s30 = smov %s1764_s10 }
 0x209   : > { %s2266_s10 = smov %s1768_s11  ;;  %s2267_s11 = smov %s1960_s29 }
 0x20a   : > { %s2268_s12 = smov %s1776_s13  ;;  %30 = sbr.rel (!%p28_p5) target bundleno = 14 (0xe), region = 137 }
 0x20d   : > { %s2269_s13 = smov %s2264_s19 }
 0x20f   :  { %1189 = vsyncpa [#allocation3], 1 }
 0x210   :  { %1191 = vsyncpa [#allocation3 + $0x1], 1 }
 0x211   :  { %1192 = vsyncpa [#allocation6], 1 }
 0x212   :  { %1193 = vsyncpa [#allocation9], 1 }
 0x213   :  { %1194 = vsyncpa [#allocation4], 1 }
 0x214   :  { %1196 = vsyncpa [#allocation4 + $0x1], 1 }
 0x215   :  { %1197 = vsyncpa [#allocation12], 1 }
 0x216   :  { %1199 = vsyncpa [#allocation12 + $0x1], 1 }

</bundles_post_ra>
